<compile_context>
chip_gen: v7x
topology: tpu7x:2x2x1
jax: 0.10.0
libtpu: 0.0.40
codegen_flags: <defaults>
</compile_context>

<pallas_src>
import functools

import jax
import jax.numpy as jnp
from jax.experimental import pallas as pl
from jax.experimental.pallas import tpu as pltpu


def _round_up(x, m):
    return ((x + m - 1) // m) * m


def _num_tensorcores():
    """v7x-class chips have 2 TensorCores per chip; v5e/v6e have 1."""
    try:
        kind = jax.devices()[0].device_kind.lower()
    except Exception:
        return 1
    return 2 if any(tag in kind for tag in ("v7", "7x")) else 1


def _autoencoder_kernel(x_ref, w_ref, b_ref, o_ref, *, n_layers, feat,
                        out_features, compute_dtype):
    """Full MLP autoencoder forward on one lane-dense batch tile.

    Layout: activations are (features, batch) with batch on the 128-lane axis.
    Weights live in one packed (n_layers*feat, feat) slab (PyTorch (out, in)
    layout, zero-padded per layer); biases in a (n_layers*feat, 1) slab.
    The batch tile is split into two independent lane halves; both chains are
    advanced in the same unrolled layer loop so one chain's MXU drain can hide
    under the other's pushes.
    """
    half = x_ref.shape[-1] // 2
    h0 = x_ref[:, :half]                         # (feat, half) f32
    h1 = x_ref[:, half:]
    for li in range(n_layers):
        lo = li * feat                            # static, multiple of 8
        w = w_ref[lo:lo + feat, :]                # (feat, feat), compute dtype
        b = b_ref[lo:lo + feat, :]                # (feat, 1), f32
        a0 = jnp.dot(w, h0.astype(compute_dtype),
                     preferred_element_type=jnp.float32) + b
        a1 = jnp.dot(w, h1.astype(compute_dtype),
                     preferred_element_type=jnp.float32) + b
        if li != n_layers - 1:                    # ReLU after every layer but last
            a0 = jnp.maximum(a0, 0.0)
            a1 = jnp.maximum(a1, 0.0)
        h0, h1 = a0, a1
    o_ref[:, :half] = h0[:out_features, :].astype(o_ref.dtype)
    o_ref[:, half:] = h1[:out_features, :].astype(o_ref.dtype)


def _fuse_latent_pair(params):
    """Fuse the latent projection and the first decoder layer.

    There is no activation between them, so they are a single affine map:
    W' = W_dec @ W_lat, b' = W_dec @ b_lat + b_dec.
    """
    params = list(params)
    mid = len(params) // 2                       # first decoder layer index
    w_lat, b_lat = params[mid - 1]
    w_dec, b_dec = params[mid]
    hi = jax.lax.Precision.HIGHEST
    w_f = jnp.dot(w_dec, w_lat, precision=hi)
    b_f = jnp.dot(w_dec, b_lat, precision=hi) + b_dec
    return params[:mid - 1] + [(w_f, b_f)] + params[mid + 1:]


def _pack_params(params, compute_dtype):
    """Pack all layers into one weight slab and one bias slab.

    Every layer is zero-padded to a uniform (feat, feat) block so the in-kernel
    matmul shapes are identical and slab row offsets are sublane (8) aligned.
    Zero-padded rows/cols are self-consistent: padded activations stay zero.
    """
    feat = _round_up(max(max(w.shape) for w, _ in params), 8)
    w_blocks, b_blocks = [], []
    for w, b in params:
        out_f, in_f = w.shape
        w_blocks.append(jnp.zeros((feat, feat), jnp.float32)
                        .at[:out_f, :in_f].set(w))
        b_blocks.append(jnp.zeros((feat, 1), jnp.float32)
                        .at[:out_f, 0].set(b))
    w_slab = jnp.concatenate(w_blocks, axis=0).astype(compute_dtype)
    b_slab = jnp.concatenate(b_blocks, axis=0)    # biases stay f32
    return w_slab, b_slab, feat


@functools.partial(jax.jit,
                   static_argnames=("batch_tile", "num_tiles", "compute_dtype"))
def _forward_impl(x, params, *, batch_tile, num_tiles, compute_dtype):
    B, input_size = x.shape
    fused = _fuse_latent_pair(params)
    n_layers = len(fused)
    w_slab, b_slab, feat = _pack_params(fused, compute_dtype)

    B_pad = batch_tile * num_tiles
    # Lane-dense transposed input; feature dim zero-padded to `feat`.
    xt = jnp.zeros((feat, B_pad), jnp.float32).at[:input_size, :B].set(x.T)

    kernel = functools.partial(
        _autoencoder_kernel, n_layers=n_layers, feat=feat,
        out_features=input_size, compute_dtype=compute_dtype)

    out_t = pl.pallas_call(
        kernel,
        out_shape=jax.ShapeDtypeStruct((input_size, B_pad), x.dtype),
        grid_spec=pltpu.PrefetchScalarGridSpec(
            num_scalar_prefetch=0,
            grid=(num_tiles,),
            in_specs=[
                pl.BlockSpec((feat, batch_tile), lambda i: (0, i)),
                pl.BlockSpec(w_slab.shape, lambda i: (0, 0)),   # VMEM resident
                pl.BlockSpec(b_slab.shape, lambda i: (0, 0)),   # VMEM resident
            ],
            out_specs=pl.BlockSpec((input_size, batch_tile), lambda i: (0, i)),
        ),
        compiler_params=pltpu.CompilerParams(
            dimension_semantics=("parallel",),
        ),
    )(xt, w_slab, b_slab)

    return out_t[:, :B].T


def autoencoder_forward(x, params, *, compute_dtype=jnp.bfloat16,
                        batch_tile=None, num_tiles=None, max_batch_tile=1024):
    """x: (B, input_size) f32.  params: list of (w, b), w (out, in), b (out,)."""
    B = x.shape[0]
    if batch_tile is not None and num_tiles is None:
        batch_tile = _round_up(batch_tile, 256)
        num_tiles = max(1, pl.cdiv(B, batch_tile))
    if num_tiles is None:
        # One grid step per TensorCore; more only if a tile would exceed the
        # spill-free cap; never more tiles than 256-row chunks of the batch.
        num_tiles = max(_num_tensorcores(), pl.cdiv(B, max_batch_tile))
        num_tiles = min(num_tiles, max(1, pl.cdiv(B, 256)))
    if batch_tile is None:
        # Multiple of 256 so each of the two in-kernel lane halves is >= 128.
        batch_tile = _round_up(pl.cdiv(B, num_tiles), 256)
    params = tuple((w, b) for w, b in params)
    return _forward_impl(x, params, batch_tile=batch_tile, num_tiles=num_tiles,
                         compute_dtype=compute_dtype)


def init_params(key, input_size, hidden_sizes, latent_size):
    """Deterministic init of all 8 Linear layers, PyTorch layout: w (out, in), b (out,)."""
    enc_dims = [input_size] + list(hidden_sizes) + [latent_size]
    dec_dims = [latent_size] + list(reversed(hidden_sizes)) + [input_size]
    dims = (list(zip(enc_dims[:-1], enc_dims[1:]))
            + list(zip(dec_dims[:-1], dec_dims[1:])))

    params = []
    for fan_in, fan_out in dims:
        key, kw, kb = jax.random.split(key, 3)
        bound = 1.0 / jnp.sqrt(fan_in)
        w = jax.random.uniform(kw, (fan_out, fan_in), jnp.float32, -bound, bound)
        b = jax.random.uniform(kb, (fan_out,), jnp.float32, -bound, bound)
        params.append((w, b))
    return params


def reference_forward(x, params):
    """Pure-JAX reference of the ORIGINAL (unfused) 8-layer forward."""
    n_layers = len(params)
    h = x
    for li, (w, b) in enumerate(params):
        h = jnp.dot(h, w.T, precision=jax.lax.Precision.HIGHEST) + b
        is_latent_proj = li == n_layers // 2 - 1
        is_final = li == n_layers - 1
        if not (is_latent_proj or is_final):
            h = jnp.maximum(h, 0.0)
    return h


if __name__ == "__main__":
    # Shapes consistent with the optuna-chosen module: 3 hidden sizes + latent.
    input_size = 16
    hidden_sizes = [32, 24, 20]
    latent_size = 8
    batch = 512

    key = jax.random.PRNGKey(0)
    key, kx = jax.random.split(key)
    x = jax.random.normal(kx, (batch, input_size), jnp.float32)
    params = init_params(key, input_size, hidden_sizes, latent_size)

    ref = reference_forward(x, params)

    # f32 MXU-operand path: tight check (also validates the latent-pair fusion).
    out_f32 = jax.block_until_ready(
        autoencoder_forward(x, params, compute_dtype=jnp.float32))
    assert out_f32.shape == (batch, input_size)
    err_f32 = float(jnp.max(jnp.abs(out_f32 - ref)))
    assert jnp.allclose(out_f32, ref, atol=5e-4, rtol=5e-4), err_f32

    # Default bf16 MXU-operand path (f32 accumulate / bias / ReLU): looser check.
    out_bf16 = jax.block_until_ready(autoencoder_forward(x, params))
    err_bf16 = float(jnp.max(jnp.abs(out_bf16 - ref)))
    assert jnp.allclose(out_bf16, ref, atol=8e-2, rtol=8e-2), err_bf16

    # Uneven batch: wrapper pads to a multiple of 256 internally and slices back.
    out_odd = jax.block_until_ready(
        autoencoder_forward(x[:300], params, compute_dtype=jnp.float32))
    assert out_odd.shape == (300, input_size)
    assert jnp.allclose(out_odd, ref[:300], atol=5e-4, rtol=5e-4)

    print("KERNEL_OK")
</pallas_src>

<mosaic_0001>
module attributes {stable_mosaic.version = 11 : i64} {
  func.func @_autoencoder_kernel(%arg0: i32, %arg1: memref<32x512xf32, #tpu.memory_space<vmem>>, %arg2: memref<224x32xf32, #tpu.memory_space<vmem>>, %arg3: memref<224x1xf32, #tpu.memory_space<vmem>>, %arg4: memref<16x512xf32, #tpu.memory_space<vmem>>) attributes {dimension_semantics = [#tpu.dimension_semantics<parallel>], iteration_bounds = array<i64: 1>, scalar_prefetch = 0 : i64, scratch_operands = 0 : i64, tpu.core_type = #tpu.core_type<tc>, window_params = [{transform_indices = @transform_0, window_bounds = array<i64: 32, 512>}, {pipeline_mode = #tpu.pipeline_mode<synchronous>, transform_indices = @transform_1, window_bounds = array<i64: 224, 32>}, {pipeline_mode = #tpu.pipeline_mode<synchronous>, transform_indices = @transform_2, window_bounds = array<i64: 224, 1>}, {transform_indices = @transform_3, window_bounds = array<i64: 16, 512>}]} {
    %c0 = arith.constant 0 : index
    %c0_0 = arith.constant 0 : index
    %0 = vector.load %arg1[%c0, %c0_0] : memref<32x512xf32, #tpu.memory_space<vmem>>, vector<32x256xf32>
    %c0_1 = arith.constant 0 : index
    %c256 = arith.constant 256 : index
    %1 = vector.load %arg1[%c0_1, %c256] : memref<32x512xf32, #tpu.memory_space<vmem>>, vector<32x256xf32>
    %c0_2 = arith.constant 0 : index
    %c0_3 = arith.constant 0 : index
    %2 = vector.load %arg2[%c0_2, %c0_3] : memref<224x32xf32, #tpu.memory_space<vmem>>, vector<32x32xf32>
    %c0_4 = arith.constant 0 : index
    %c0_5 = arith.constant 0 : index
    %3 = vector.load %arg3[%c0_4, %c0_5] : memref<224x1xf32, #tpu.memory_space<vmem>>, vector<32x1xf32>
    %cst = arith.constant dense<0.000000e+00> : vector<32x256xf32>
    %4 = tpu.matmul %2, %0, %cst {dimension_numbers = #tpu.dot_dimension_numbers<[1], [0], [0], [1], [0, 0, 1, 1], [], []>} : vector<32x32xf32>, vector<32x256xf32>, vector<32x256xf32> -> vector<32x256xf32>
    %5 = vector.broadcast %3 : vector<32x1xf32> to vector<32x256xf32>
    %6 = arith.addf %4, %5 : vector<32x256xf32>
    %cst_6 = arith.constant dense<0.000000e+00> : vector<32x256xf32>
    %7 = tpu.matmul %2, %1, %cst_6 {dimension_numbers = #tpu.dot_dimension_numbers<[1], [0], [0], [1], [0, 0, 1, 1], [], []>} : vector<32x32xf32>, vector<32x256xf32>, vector<32x256xf32> -> vector<32x256xf32>
    %8 = vector.broadcast %3 : vector<32x1xf32> to vector<32x256xf32>
    %9 = arith.addf %7, %8 : vector<32x256xf32>
    %cst_7 = arith.constant 0.000000e+00 : f32
    %10 = vector.broadcast %cst_7 : f32 to vector<32x256xf32>
    %11 = arith.maximumf %6, %10 : vector<32x256xf32>
    %cst_8 = arith.constant 0.000000e+00 : f32
    %12 = vector.broadcast %cst_8 : f32 to vector<32x256xf32>
    %13 = arith.maximumf %9, %12 : vector<32x256xf32>
    %c32 = arith.constant 32 : index
    %c0_9 = arith.constant 0 : index
    %14 = vector.load %arg2[%c32, %c0_9] : memref<224x32xf32, #tpu.memory_space<vmem>>, vector<32x32xf32>
    %c32_10 = arith.constant 32 : index
    %c0_11 = arith.constant 0 : index
    %15 = vector.load %arg3[%c32_10, %c0_11] : memref<224x1xf32, #tpu.memory_space<vmem>>, vector<32x1xf32>
    %cst_12 = arith.constant dense<0.000000e+00> : vector<32x256xf32>
    %16 = tpu.matmul %14, %11, %cst_12 {dimension_numbers = #tpu.dot_dimension_numbers<[1], [0], [0], [1], [0, 0, 1, 1], [], []>} : vector<32x32xf32>, vector<32x256xf32>, vector<32x256xf32> -> vector<32x256xf32>
    %17 = vector.broadcast %15 : vector<32x1xf32> to vector<32x256xf32>
    %18 = arith.addf %16, %17 : vector<32x256xf32>
    %cst_13 = arith.constant dense<0.000000e+00> : vector<32x256xf32>
    %19 = tpu.matmul %14, %13, %cst_13 {dimension_numbers = #tpu.dot_dimension_numbers<[1], [0], [0], [1], [0, 0, 1, 1], [], []>} : vector<32x32xf32>, vector<32x256xf32>, vector<32x256xf32> -> vector<32x256xf32>
    %20 = vector.broadcast %15 : vector<32x1xf32> to vector<32x256xf32>
    %21 = arith.addf %19, %20 : vector<32x256xf32>
    %cst_14 = arith.constant 0.000000e+00 : f32
    %22 = vector.broadcast %cst_14 : f32 to vector<32x256xf32>
    %23 = arith.maximumf %18, %22 : vector<32x256xf32>
    %cst_15 = arith.constant 0.000000e+00 : f32
    %24 = vector.broadcast %cst_15 : f32 to vector<32x256xf32>
    %25 = arith.maximumf %21, %24 : vector<32x256xf32>
    %c64 = arith.constant 64 : index
    %c0_16 = arith.constant 0 : index
    %26 = vector.load %arg2[%c64, %c0_16] : memref<224x32xf32, #tpu.memory_space<vmem>>, vector<32x32xf32>
    %c64_17 = arith.constant 64 : index
    %c0_18 = arith.constant 0 : index
    %27 = vector.load %arg3[%c64_17, %c0_18] : memref<224x1xf32, #tpu.memory_space<vmem>>, vector<32x1xf32>
    %cst_19 = arith.constant dense<0.000000e+00> : vector<32x256xf32>
    %28 = tpu.matmul %26, %23, %cst_19 {dimension_numbers = #tpu.dot_dimension_numbers<[1], [0], [0], [1], [0, 0, 1, 1], [], []>} : vector<32x32xf32>, vector<32x256xf32>, vector<32x256xf32> -> vector<32x256xf32>
    %29 = vector.broadcast %27 : vector<32x1xf32> to vector<32x256xf32>
    %30 = arith.addf %28, %29 : vector<32x256xf32>
    %cst_20 = arith.constant dense<0.000000e+00> : vector<32x256xf32>
    %31 = tpu.matmul %26, %25, %cst_20 {dimension_numbers = #tpu.dot_dimension_numbers<[1], [0], [0], [1], [0, 0, 1, 1], [], []>} : vector<32x32xf32>, vector<32x256xf32>, vector<32x256xf32> -> vector<32x256xf32>
    %32 = vector.broadcast %27 : vector<32x1xf32> to vector<32x256xf32>
    %33 = arith.addf %31, %32 : vector<32x256xf32>
    %cst_21 = arith.constant 0.000000e+00 : f32
    %34 = vector.broadcast %cst_21 : f32 to vector<32x256xf32>
    %35 = arith.maximumf %30, %34 : vector<32x256xf32>
    %cst_22 = arith.constant 0.000000e+00 : f32
    %36 = vector.broadcast %cst_22 : f32 to vector<32x256xf32>
    %37 = arith.maximumf %33, %36 : vector<32x256xf32>
    %c96 = arith.constant 96 : index
    %c0_23 = arith.constant 0 : index
    %38 = vector.load %arg2[%c96, %c0_23] : memref<224x32xf32, #tpu.memory_space<vmem>>, vector<32x32xf32>
    %c96_24 = arith.constant 96 : index
    %c0_25 = arith.constant 0 : index
    %39 = vector.load %arg3[%c96_24, %c0_25] : memref<224x1xf32, #tpu.memory_space<vmem>>, vector<32x1xf32>
    %cst_26 = arith.constant dense<0.000000e+00> : vector<32x256xf32>
    %40 = tpu.matmul %38, %35, %cst_26 {dimension_numbers = #tpu.dot_dimension_numbers<[1], [0], [0], [1], [0, 0, 1, 1], [], []>} : vector<32x32xf32>, vector<32x256xf32>, vector<32x256xf32> -> vector<32x256xf32>
    %41 = vector.broadcast %39 : vector<32x1xf32> to vector<32x256xf32>
    %42 = arith.addf %40, %41 : vector<32x256xf32>
    %cst_27 = arith.constant dense<0.000000e+00> : vector<32x256xf32>
    %43 = tpu.matmul %38, %37, %cst_27 {dimension_numbers = #tpu.dot_dimension_numbers<[1], [0], [0], [1], [0, 0, 1, 1], [], []>} : vector<32x32xf32>, vector<32x256xf32>, vector<32x256xf32> -> vector<32x256xf32>
    %44 = vector.broadcast %39 : vector<32x1xf32> to vector<32x256xf32>
    %45 = arith.addf %43, %44 : vector<32x256xf32>
    %cst_28 = arith.constant 0.000000e+00 : f32
    %46 = vector.broadcast %cst_28 : f32 to vector<32x256xf32>
    %47 = arith.maximumf %42, %46 : vector<32x256xf32>
    %cst_29 = arith.constant 0.000000e+00 : f32
    %48 = vector.broadcast %cst_29 : f32 to vector<32x256xf32>
    %49 = arith.maximumf %45, %48 : vector<32x256xf32>
    %c128 = arith.constant 128 : index
    %c0_30 = arith.constant 0 : index
    %50 = vector.load %arg2[%c128, %c0_30] : memref<224x32xf32, #tpu.memory_space<vmem>>, vector<32x32xf32>
    %c128_31 = arith.constant 128 : index
    %c0_32 = arith.constant 0 : index
    %51 = vector.load %arg3[%c128_31, %c0_32] : memref<224x1xf32, #tpu.memory_space<vmem>>, vector<32x1xf32>
    %cst_33 = arith.constant dense<0.000000e+00> : vector<32x256xf32>
    %52 = tpu.matmul %50, %47, %cst_33 {dimension_numbers = #tpu.dot_dimension_numbers<[1], [0], [0], [1], [0, 0, 1, 1], [], []>} : vector<32x32xf32>, vector<32x256xf32>, vector<32x256xf32> -> vector<32x256xf32>
    %53 = vector.broadcast %51 : vector<32x1xf32> to vector<32x256xf32>
    %54 = arith.addf %52, %53 : vector<32x256xf32>
    %cst_34 = arith.constant dense<0.000000e+00> : vector<32x256xf32>
    %55 = tpu.matmul %50, %49, %cst_34 {dimension_numbers = #tpu.dot_dimension_numbers<[1], [0], [0], [1], [0, 0, 1, 1], [], []>} : vector<32x32xf32>, vector<32x256xf32>, vector<32x256xf32> -> vector<32x256xf32>
    %56 = vector.broadcast %51 : vector<32x1xf32> to vector<32x256xf32>
    %57 = arith.addf %55, %56 : vector<32x256xf32>
    %cst_35 = arith.constant 0.000000e+00 : f32
    %58 = vector.broadcast %cst_35 : f32 to vector<32x256xf32>
    %59 = arith.maximumf %54, %58 : vector<32x256xf32>
    %cst_36 = arith.constant 0.000000e+00 : f32
    %60 = vector.broadcast %cst_36 : f32 to vector<32x256xf32>
    %61 = arith.maximumf %57, %60 : vector<32x256xf32>
    %c160 = arith.constant 160 : index
    %c0_37 = arith.constant 0 : index
    %62 = vector.load %arg2[%c160, %c0_37] : memref<224x32xf32, #tpu.memory_space<vmem>>, vector<32x32xf32>
    %c160_38 = arith.constant 160 : index
    %c0_39 = arith.constant 0 : index
    %63 = vector.load %arg3[%c160_38, %c0_39] : memref<224x1xf32, #tpu.memory_space<vmem>>, vector<32x1xf32>
    %cst_40 = arith.constant dense<0.000000e+00> : vector<32x256xf32>
    %64 = tpu.matmul %62, %59, %cst_40 {dimension_numbers = #tpu.dot_dimension_numbers<[1], [0], [0], [1], [0, 0, 1, 1], [], []>} : vector<32x32xf32>, vector<32x256xf32>, vector<32x256xf32> -> vector<32x256xf32>
    %65 = vector.broadcast %63 : vector<32x1xf32> to vector<32x256xf32>
    %66 = arith.addf %64, %65 : vector<32x256xf32>
    %cst_41 = arith.constant dense<0.000000e+00> : vector<32x256xf32>
    %67 = tpu.matmul %62, %61, %cst_41 {dimension_numbers = #tpu.dot_dimension_numbers<[1], [0], [0], [1], [0, 0, 1, 1], [], []>} : vector<32x32xf32>, vector<32x256xf32>, vector<32x256xf32> -> vector<32x256xf32>
    %68 = vector.broadcast %63 : vector<32x1xf32> to vector<32x256xf32>
    %69 = arith.addf %67, %68 : vector<32x256xf32>
    %cst_42 = arith.constant 0.000000e+00 : f32
    %70 = vector.broadcast %cst_42 : f32 to vector<32x256xf32>
    %71 = arith.maximumf %66, %70 : vector<32x256xf32>
    %cst_43 = arith.constant 0.000000e+00 : f32
    %72 = vector.broadcast %cst_43 : f32 to vector<32x256xf32>
    %73 = arith.maximumf %69, %72 : vector<32x256xf32>
    %c192 = arith.constant 192 : index
    %c0_44 = arith.constant 0 : index
    %74 = vector.load %arg2[%c192, %c0_44] : memref<224x32xf32, #tpu.memory_space<vmem>>, vector<32x32xf32>
    %c192_45 = arith.constant 192 : index
    %c0_46 = arith.constant 0 : index
    %75 = vector.load %arg3[%c192_45, %c0_46] : memref<224x1xf32, #tpu.memory_space<vmem>>, vector<32x1xf32>
    %cst_47 = arith.constant dense<0.000000e+00> : vector<32x256xf32>
    %76 = tpu.matmul %74, %71, %cst_47 {dimension_numbers = #tpu.dot_dimension_numbers<[1], [0], [0], [1], [0, 0, 1, 1], [], []>} : vector<32x32xf32>, vector<32x256xf32>, vector<32x256xf32> -> vector<32x256xf32>
    %77 = vector.broadcast %75 : vector<32x1xf32> to vector<32x256xf32>
    %78 = arith.addf %76, %77 : vector<32x256xf32>
    %cst_48 = arith.constant dense<0.000000e+00> : vector<32x256xf32>
    %79 = tpu.matmul %74, %73, %cst_48 {dimension_numbers = #tpu.dot_dimension_numbers<[1], [0], [0], [1], [0, 0, 1, 1], [], []>} : vector<32x32xf32>, vector<32x256xf32>, vector<32x256xf32> -> vector<32x256xf32>
    %80 = vector.broadcast %75 : vector<32x1xf32> to vector<32x256xf32>
    %81 = arith.addf %79, %80 : vector<32x256xf32>
    %82 = vector.extract_strided_slice %78 {offsets = [0, 0], sizes = [16, 256], strides = [1, 1]} : vector<32x256xf32> to vector<16x256xf32>
    %c0_49 = arith.constant 0 : index
    %c0_50 = arith.constant 0 : index
    %83 = vector.load %arg4[%c0_49, %c0_50] : memref<16x512xf32, #tpu.memory_space<vmem>>, vector<16x256xf32>
    tpu.vector_store %arg4[%c0_49, %c0_50], %82 {strides = array<i32>} : memref<16x512xf32, #tpu.memory_space<vmem>>, vector<16x256xf32>,
    %84 = vector.extract_strided_slice %81 {offsets = [0, 0], sizes = [16, 256], strides = [1, 1]} : vector<32x256xf32> to vector<16x256xf32>
    %c0_51 = arith.constant 0 : index
    %c256_52 = arith.constant 256 : index
    %85 = vector.load %arg4[%c0_51, %c256_52] : memref<16x512xf32, #tpu.memory_space<vmem>>, vector<16x256xf32>
    tpu.vector_store %arg4[%c0_51, %c256_52], %84 {strides = array<i32>} : memref<16x512xf32, #tpu.memory_space<vmem>>, vector<16x256xf32>,
    return
  }
  func.func @transform_0(%arg0: i32) -> (i32, i32) {
    %c0_i32 = arith.constant 0 : i32
    %c0_i32_0 = arith.constant 0 : i32
    return %c0_i32, %arg0 : i32, i32
  }
  func.func @transform_1(%arg0: i32) -> (i32, i32) {
    %c0_i32 = arith.constant 0 : i32
    %c0_i32_0 = arith.constant 0 : i32
    %c0_i32_1 = arith.constant 0 : i32
    return %c0_i32, %c0_i32_0 : i32, i32
  }
  func.func @transform_2(%arg0: i32) -> (i32, i32) {
    %c0_i32 = arith.constant 0 : i32
    %c0_i32_0 = arith.constant 0 : i32
    %c0_i32_1 = arith.constant 0 : i32
    return %c0_i32, %c0_i32_0 : i32, i32
  }
  func.func @transform_3(%arg0: i32) -> (i32, i32) {
    %c0_i32 = arith.constant 0 : i32
    %c0_i32_0 = arith.constant 0 : i32
    return %c0_i32, %arg0 : i32, i32
  }
}

</mosaic_0001>

<bundles_post_ra>
// kernel: _forward_impl.1
= control target key start
LH: loop header
LB: loop body
LE: loop exit
PB: predicated region body
PF: predicated region fallthrough
CT: control target
= control target key end

     0   :  { %v1867_v7 = vmov 0.0   ;;  %v1868_v13 = vmov 0   ;;  %vm59_vm0 = vcmask 261120   ;;  %s2226_s0 = inlined_call_operand.vmem [shape: f32[32,512], index: 0, kind: input, shape index: {}]   ;;  %s2227_s1 = inlined_call_operand.vmem [shape: f32[224,32], index: 1, kind: input, shape index: {}]   ;;  %s2228_s2 = inlined_call_operand.vmem [shape: f32[224,1], index: 2, kind: input, shape index: {}]   ;;  %s2229_s3 = inlined_call_operand.hbm [shape: f32[16,512], index: 3, kind: output, shape index: {}]  }
   0x1   :  { %v16_v0 = vld [vmem:[%s2226_s0 + $0x8] sm:$0xff]  ;;  %v24_v2 = vld [vmem:[%s2226_s0 + $0x18] sm:$0xff]  ;;  %v15_v5 = vld [vmem:[%s2226_s0] sm:$0xff]  ;;  %136 = vmatprep.mubr.f32.mxu0 %v1867_v7  ;;  %225 = vmatprep.mubr.f32.mxu1 %v1867_v7 }
   0x2   :  { %v18_v1 = vld [vmem:[%s2226_s0 + $0x28] sm:$0xff]  ;;  %v26_v4 = vld [vmem:[%s2226_s0 + $0x38] sm:$0xff]  ;;  %v17_v6 = vld [vmem:[%s2226_s0 + $0x20] sm:$0xff]  ;;  %1841 = vset.pattern.permute.xlu0 %v1868_v13  ;;  %1842 = vset.pattern.permute.xlu1 %v1868_v13 }
   0x3   :  { %v1724_v3 = vpack.c.bf16 %v18_v1, %v16_v0  ;;  %v1732_v8 = vpack.c.bf16 %v26_v4, %v24_v2  ;;  %v1726_v9 = vpack.c.bf16 %v17_v6, %v15_v5  ;;  %v23_v10 = vld [vmem:[%s2226_s0 + $0x10] sm:$0xff]  ;;  %v20_v12 = vld [vmem:[%s2226_s0 + $0x48] sm:$0xff]  ;;  %v28_v16 = vld [vmem:[%s2226_s0 + $0x58] sm:$0xff] }
   0x4   :  { %v25_v11 = vld [vmem:[%s2226_s0 + $0x30] sm:$0xff]  ;;  %v22_v15 = vld [vmem:[%s2226_s0 + $0x68] sm:$0xff]  ;;  %v30_v17 = vld [vmem:[%s2226_s0 + $0x78] sm:$0xff] }
   0x5   :  { %1725 = vmatprep.subr.bf16.mxu0 %v1724_v3  ;;  %v1734_v14 = vpack.c.bf16 %v25_v11, %v23_v10  ;;  %1733 = vmatprep.subr.bf16.mxu1 %v1732_v8  ;;  %v1728_v18 = vpack.c.bf16 %v22_v15, %v20_v12  ;;  %v1736_v19 = vpack.c.bf16 %v30_v17, %v28_v16  ;;  %v19_v20 = vld [vmem:[%s2226_s0 + $0x40] sm:$0xff]  ;;  %v27_v22 = vld [vmem:[%s2226_s0 + $0x50] sm:$0xff]  ;;  %v36_v29 = vld [vmem:[%s2228_s2 + $0x8] sm:$0xff] }
   0x6   :  { %1727 = vmatpush1.bf16.msra.mxu0 %v1726_v9  ;;  %v21_v21 = vld [vmem:[%s2226_s0 + $0x60] sm:$0xff]  ;;  %v29_v24 = vld [vmem:[%s2226_s0 + $0x70] sm:$0xff]  ;;  %v38_v30 = vld [vmem:[%s2228_s2 + $0x18] sm:$0xff] }
   0x7   :  { %1735 = vmatpush1.bf16.msra.mxu1 %v1734_v14  ;;  %v1730_v23 = vpack.c.bf16 %v21_v21, %v19_v20  ;;  %1729 = vmatprep.subr.bf16.mxu0 %v1728_v18  ;;  %v1738_v25 = vpack.c.bf16 %v29_v24, %v27_v22  ;;  %v35_v26 = vld [vmem:[%s2228_s2] sm:$0xff]  ;;  %v37_v27 = vld [vmem:[%s2228_s2 + $0x10] sm:$0xff]  ;;  %v32_v31 = vld [vmem:[%s2227_s1 + $0x8] sm:$0xff] }
   0x8   :  { %1737 = vmatprep.subr.bf16.mxu1 %v1736_v19  ;;  %41 = vperm.xlu0 %1841, %v35_v26   ;;  %v31_v28 = vld [vmem:[%s2227_s1] sm:$0xff]  ;;  %v271_v33 = vld [vmem:[%s2228_s2 + $0x28] sm:$0xff] }
   0x9   :  { %51 = vperm.xlu1 %1842, %v37_v27   ;;  %v270_v32 = vld [vmem:[%s2228_s2 + $0x20] sm:$0xff] }
   0xa   :  { %1731 = vmatpush1.bf16.msra.mxu0 %v1730_v23 }
   0xb   :  { %1739 = vmatpush1.bf16.msra.mxu1 %v1738_v25 }
   0xc   :  { %46 = vperm.xlu0 %1841, %v36_v29  }
   0xd   :  { %1668 = vmatmul.mubr.msk.f32.vlgmr.msra.gmra.mrb[0].mxu0 %vm59_vm0, %v31_v28  ;;  %56 = vperm.xlu1 %1842, %v38_v30  }
   0xe   :  { %1672 = vmatmul.mubr.msk.f32.vlgmr.msra.gmra.mrb[0].mxu1 %vm59_vm0, %v31_v28  ;;  %142 = vmatprep.mubr.f32.mxu0 %v1867_v7 }
   0xf   :  { %231 = vmatprep.mubr.f32.mxu1 %v1867_v7 }
  0x10   :  { %276 = vperm.xlu0 %1841, %v270_v32  }
  0x11   :  { %1669 = vmatmul.mubr.msk.f32.gmra.mrb[2].mxu0 %vm59_vm0, %v32_v31 }
  0x12   :  { %8 = vsyncpa [#allocation3], 0  ;;  %1673 = vmatmul.mubr.msk.f32.gmra.mrb[2].mxu1 %vm59_vm0, %v32_v31  ;;  %148 = vmatprep.mubr.f32.mxu0 %v1867_v7  ;;  %v33_v34 = vld [vmem:[%s2227_s1 + $0x10] sm:$0xff]  ;;  %v273_v36 = vld [vmem:[%s2228_s2 + $0x38] sm:$0xff]  ;;  %s1869_s11 = smov [#allocation2]  }
  0x13   :  { %v272_v35 = vld [vmem:[%s2228_s2 + $0x30] sm:$0xff]  ;;  %237 = vmatprep.mubr.f32.mxu1 %v1867_v7  ;;  %281 = vperm.xlu1 %1842, %v271_v33   ;;  %v34_v37 = vld [vmem:[%s2227_s1 + $0x18] sm:$0xff]  ;;  %v504_v38 = vld [vmem:[%s2228_s2 + $0x40] sm:$0xff]  ;;  %s1657_s12 = sshll.u32 %s1869_s11, 4  ;;  %s1658_s12 = int_to_ptr.vmem [resolvable:$true] %s1657_s12 }
  0x14   :  { %286 = vperm.xlu0 %1841, %v272_v35   ;;  %v505_v39 = vld [vmem:[%s2228_s2 + $0x48] sm:$0xff]  ;;  %v506_v40 = vld [vmem:[%s2228_s2 + $0x50] sm:$0xff]  ;;  %v507_v41 = vld [vmem:[%s2228_s2 + $0x58] sm:$0xff]  ;;  %p1848_p1 = scmp.lt.s32.totalorder %s1658_s12, %s1658_s12 }
  0x15   :  { %1670 = vmatmul.mubr.msk.f32.gmra.mrb[4].mxu0 %vm59_vm0, %v33_v34  ;;  %v738_v42 = vld [vmem:[%s2228_s2 + $0x60] sm:$0xff]  ;;  %v739_v43 = vld [vmem:[%s2228_s2 + $0x68] sm:$0xff]  ;;  %v740_v44 = vld [vmem:[%s2228_s2 + $0x70] sm:$0xff] }
  0x16   :  { %1674 = vmatmul.mubr.msk.f32.gmra.mrb[4].mxu1 %vm59_vm0, %v33_v34  ;;  %154 = vmatprep.mubr.f32.mxu0 %v1867_v7  ;;  %v741_v45 = vld [vmem:[%s2228_s2 + $0x78] sm:$0xff]  ;;  %v972_v46 = vld [vmem:[%s2228_s2 + $0x80] sm:$0xff]  ;;  %v973_v47 = vld [vmem:[%s2228_s2 + $0x88] sm:$0xff] }
  0x17   :  { %243 = vmatprep.mubr.f32.mxu1 %v1867_v7  ;;  %291 = vperm.xlu1 %1842, %v273_v36   ;;  %v974_v48 = vld [vmem:[%s2228_s2 + $0x90] sm:$0xff]  ;;  %v975_v49 = vld [vmem:[%s2228_s2 + $0x98] sm:$0xff]  ;;  %v1206_v50 = vld [vmem:[%s2228_s2 + $0xa0] sm:$0xff] }
  0x18   :  { %510 = vperm.xlu0 %1841, %v504_v38   ;;  %v1207_v51 = vld [vmem:[%s2228_s2 + $0xa8] sm:$0xff]  ;;  %v1208_v52 = vld [vmem:[%s2228_s2 + $0xb0] sm:$0xff]  ;;  %v1209_v53 = vld [vmem:[%s2228_s2 + $0xb8] sm:$0xff] }
  0x19   :  { %1671 = vmatmul.mubr.msk.f32.gmra.mrb[6].mxu0 %vm59_vm0, %v34_v37  ;;  %v1440_v54 = vld [vmem:[%s2228_s2 + $0xc0] sm:$0xff]  ;;  %v1441_v55 = vld [vmem:[%s2228_s2 + $0xc8] sm:$0xff] }
  0x1a   :  { %1675 = vmatmul.mubr.msk.f32.gmra.mrb[6].mxu1 %vm59_vm0, %v34_v37  ;;  %370 = vmatprep.mubr.f32.mxu0 %v1867_v7 }
  0x1b   :  { %515 = vperm.xlu1 %1842, %v505_v39   ;;  %459 = vmatprep.mubr.f32.mxu1 %v1867_v7 }
  0x1c   :  { %520 = vperm.xlu0 %1841, %v506_v40  }
  0x1f   :  { %525 = vperm.xlu1 %1842, %v507_v41  }
  0x20   :  { %744 = vperm.xlu0 %1841, %v738_v42  }
  0x23   :  { %749 = vperm.xlu1 %1842, %v739_v43  }
  0x24   :  { %754 = vperm.xlu0 %1841, %v740_v44  }
  0x27   :  { %759 = vperm.xlu1 %1842, %v741_v45  }
  0x28   :  { %978 = vperm.xlu0 %1841, %v972_v46  }
  0x2b   :  { %983 = vperm.xlu1 %1842, %v973_v47  }
  0x2c   :  { %988 = vperm.xlu0 %1841, %v974_v48  }
  0x2f   :  { %993 = vperm.xlu1 %1842, %v975_v49  }
  0x30   :  { %1212 = vperm.xlu0 %1841, %v1206_v50  }
  0x33   :  { %1217 = vperm.xlu1 %1842, %v1207_v51  }
  0x34   :  { %1222 = vperm.xlu0 %1841, %v1208_v52  }
  0x37   :  { %1227 = vperm.xlu1 %1842, %v1209_v53   ;;  %v266_v53 = vld [vmem:[%s2227_s1 + $0x20] sm:$0xff] }
  0x38   :  { %1446 = vperm.xlu0 %1841, %v1440_v54   ;;  %v267_v54 = vld [vmem:[%s2227_s1 + $0x28] sm:$0xff] }
  0x3b   :  { %1451 = vperm.xlu1 %1842, %v1441_v55   ;;  %v268_v55 = vld [vmem:[%s2227_s1 + $0x30] sm:$0xff] }
  0x87   :  { %v42_v56 = vpop.permute.xlu0 %41 }
  0x88   :  { %v52_v6 = vpop.permute.xlu1 %51 }
  0x8b   :  { %v47_v62 = vpop.permute.xlu0 %46 }
  0x8c   :  { %v57_v29 = vpop.permute.xlu1 %56 }
  0xe0   :  { %v138_v57 = vpop.f32.mrb[0].mxu0 }
  0xe1   :  { %v227_v58 = vpop.f32.mrb[0].mxu1  ;;  %v140_v59 = vpop.f32.mrb[1].mxu0  ;;  %v139_v61 = vadd.f32 %v138_v57, %v42_v56 }
  0xe2   :  { %v229_v60 = vpop.f32.mrb[1].mxu1  ;;  %v228_v63 = vadd.f32 %v227_v58, %v42_v56  ;;  %v141_v0 = vadd.f32 %v140_v59, %v42_v56 }
  0xe3   :  { %v230_v2 = vadd.f32 %v229_v60, %v42_v56  ;;  %v250_v11 = vmax.f32 %v139_v61, 0.0  ;;  %v269_v56 = vld [vmem:[%s2227_s1 + $0x38] sm:$0xff]  ;;  %v277_v60 = vpop.permute.xlu0 %276 }
  0xe4   :  { %v144_v1 = vpop.f32.mrb[2].mxu0  ;;  %v258_v14 = vmax.f32 %v228_v63, 0.0  ;;  %v251_v15 = vmax.f32 %v141_v0, 0.0  ;;  %v282_v63 = vpop.permute.xlu1 %281 }
  0xe5   :  { %v145_v3 = vadd.f32 %v144_v1, %v47_v62  ;;  %v233_v4 = vpop.f32.mrb[2].mxu1  ;;  %v146_v5 = vpop.f32.mrb[3].mxu0  ;;  %v259_v19 = vmax.f32 %v230_v2, 0.0 }
  0xe6   :  { %v234_v8 = vadd.f32 %v233_v4, %v47_v62  ;;  %v147_v9 = vadd.f32 %v146_v5, %v47_v62  ;;  %v235_v10 = vpop.f32.mrb[3].mxu1 }
  0xe7   :  { %v252_v12 = vmax.f32 %v145_v3, 0.0  ;;  %v236_v13 = vadd.f32 %v235_v10, %v47_v62 }
  0xe8   :  { %v260_v16 = vmax.f32 %v234_v8, 0.0  ;;  %v253_v17 = vmax.f32 %v147_v9, 0.0  ;;  %v150_v18 = vpop.f32.mrb[4].mxu0 }
  0xe9   :  { %v1742_v20 = vpack.c.bf16 %v252_v12, %v250_v11  ;;  %v261_v21 = vmax.f32 %v236_v13, 0.0  ;;  %v239_v22 = vpop.f32.mrb[4].mxu1  ;;  %v152_v23 = vpop.f32.mrb[5].mxu0  ;;  %v151_v28 = vadd.f32 %v150_v18, %v52_v6 }
  0xea   :  { %v1750_v24 = vpack.c.bf16 %v260_v16, %v258_v14  ;;  %v1740_v25 = vpack.c.bf16 %v253_v17, %v251_v15  ;;  %v241_v26 = vpop.f32.mrb[5].mxu1  ;;  %v240_v30 = vadd.f32 %v239_v22, %v52_v6  ;;  %v153_v31 = vadd.f32 %v152_v23, %v52_v6 }
  0xeb   :  { %v1748_v27 = vpack.c.bf16 %v261_v21, %v259_v19  ;;  %v242_v33 = vadd.f32 %v241_v26, %v52_v6  ;;  %v254_v40 = vmax.f32 %v151_v28, 0.0 }
  0xec   :  { %v156_v32 = vpop.f32.mrb[6].mxu0  ;;  %1741 = vmatprep.subr.bf16.mxu0 %v1740_v25  ;;  %v262_v43 = vmax.f32 %v240_v30, 0.0  ;;  %v255_v44 = vmax.f32 %v153_v31, 0.0  ;;  %v292_v30 = vpop.permute.xlu1 %291 }
  0xed   :  { %v157_v34 = vadd.f32 %v156_v32, %v57_v29  ;;  %v245_v35 = vpop.f32.mrb[6].mxu1  ;;  %1749 = vmatprep.subr.bf16.mxu1 %v1748_v27  ;;  %v158_v36 = vpop.f32.mrb[7].mxu0  ;;  %1743 = vmatpush1.bf16.msra.mxu0 %v1742_v20  ;;  %v263_v47 = vmax.f32 %v242_v33, 0.0 }
  0xee   :  { %v246_v37 = vadd.f32 %v245_v35, %v57_v29  ;;  %v159_v38 = vadd.f32 %v158_v36, %v57_v29  ;;  %v247_v39 = vpop.f32.mrb[7].mxu1  ;;  %1751 = vmatpush1.bf16.msra.mxu1 %v1750_v24  ;;  %v287_v24 = vpop.permute.xlu0 %286 }
  0xef   :  { %v256_v41 = vmax.f32 %v157_v34, 0.0  ;;  %v248_v42 = vadd.f32 %v247_v39, %v57_v29 }
  0xf0   :  { %v264_v45 = vmax.f32 %v246_v37, 0.0  ;;  %v257_v46 = vmax.f32 %v159_v38, 0.0 }
  0xf1   :  { %v1746_v48 = vpack.c.bf16 %v256_v41, %v254_v40  ;;  %v265_v49 = vmax.f32 %v248_v42, 0.0 }
  0xf2   :  { %v1754_v50 = vpack.c.bf16 %v264_v45, %v262_v43  ;;  %v1744_v51 = vpack.c.bf16 %v257_v46, %v255_v44 }
  0xf3   :  { %v1752_v52 = vpack.c.bf16 %v265_v49, %v263_v47 }
  0xf4   :  { %1745 = vmatprep.subr.bf16.mxu0 %v1744_v51 }
  0xf5   :  { %1753 = vmatprep.subr.bf16.mxu1 %v1752_v52  ;;  %1747 = vmatpush1.bf16.msra.mxu0 %v1746_v48 }
  0xf6   :  { %1755 = vmatpush1.bf16.msra.mxu1 %v1754_v50 }
  0xf8   :  { %1676 = vmatmul.mubr.msk.f32.vlgmr.msra.gmra.mrb[8].mxu0 %vm59_vm0, %v266_v53 }
  0xf9   :  { %1680 = vmatmul.mubr.msk.f32.vlgmr.msra.gmra.mrb[8].mxu1 %vm59_vm0, %v266_v53  ;;  %376 = vmatprep.mubr.f32.mxu0 %v1867_v7 }
  0xfa   :  { %465 = vmatprep.mubr.f32.mxu1 %v1867_v7 }
  0xfc   :  { %1677 = vmatmul.mubr.msk.f32.gmra.mrb[10].mxu0 %vm59_vm0, %v267_v54 }
  0xfd   :  { %1681 = vmatmul.mubr.msk.f32.gmra.mrb[10].mxu1 %vm59_vm0, %v267_v54  ;;  %382 = vmatprep.mubr.f32.mxu0 %v1867_v7  ;;  %v500_v54 = vld [vmem:[%s2227_s1 + $0x40] sm:$0xff] }
  0xfe   :  { %471 = vmatprep.mubr.f32.mxu1 %v1867_v7 }
 0x100   :  { %1678 = vmatmul.mubr.msk.f32.gmra.mrb[12].mxu0 %vm59_vm0, %v268_v55 }
 0x101   :  { %1682 = vmatmul.mubr.msk.f32.gmra.mrb[12].mxu1 %vm59_vm0, %v268_v55  ;;  %388 = vmatprep.mubr.f32.mxu0 %v1867_v7  ;;  %v501_v55 = vld [vmem:[%s2227_s1 + $0x48] sm:$0xff] }
 0x102   :  { %477 = vmatprep.mubr.f32.mxu1 %v1867_v7 }
 0x104   :  { %1679 = vmatmul.mubr.msk.f32.gmra.mrb[14].mxu0 %vm59_vm0, %v269_v56 }
 0x105   :  { %1683 = vmatmul.mubr.msk.f32.gmra.mrb[14].mxu1 %vm59_vm0, %v269_v56  ;;  %604 = vmatprep.mubr.f32.mxu0 %v1867_v7  ;;  %v502_v56 = vld [vmem:[%s2227_s1 + $0x50] sm:$0xff] }
 0x106   :  { %693 = vmatprep.mubr.f32.mxu1 %v1867_v7 }
 0x1cb   :  { %v372_v57 = vpop.f32.mrb[8].mxu0 }
 0x1cc   :  { %v461_v58 = vpop.f32.mrb[8].mxu1  ;;  %v374_v59 = vpop.f32.mrb[9].mxu0  ;;  %v373_v62 = vadd.f32 %v372_v57, %v277_v60  ;;  %v503_v57 = vld [vmem:[%s2227_s1 + $0x58] sm:$0xff] }
 0x1cd   :  { %v463_v61 = vpop.f32.mrb[9].mxu1  ;;  %v462_v0 = vadd.f32 %v461_v58, %v277_v60  ;;  %v375_v1 = vadd.f32 %v374_v59, %v277_v60 }
 0x1ce   :  { %v464_v3 = vadd.f32 %v463_v61, %v277_v60  ;;  %v484_v11 = vmax.f32 %v373_v62, 0.0  ;;  %v511_v61 = vpop.permute.xlu0 %510 }
 0x1cf   :  { %v378_v2 = vpop.f32.mrb[10].mxu0  ;;  %v492_v14 = vmax.f32 %v462_v0, 0.0  ;;  %v485_v15 = vmax.f32 %v375_v1, 0.0  ;;  %v516_v0 = vpop.permute.xlu1 %515 }
 0x1d0   :  { %v379_v4 = vadd.f32 %v378_v2, %v282_v63  ;;  %v467_v5 = vpop.f32.mrb[10].mxu1  ;;  %v380_v6 = vpop.f32.mrb[11].mxu0  ;;  %v493_v19 = vmax.f32 %v464_v3, 0.0 }
 0x1d1   :  { %v468_v8 = vadd.f32 %v467_v5, %v282_v63  ;;  %v381_v9 = vadd.f32 %v380_v6, %v282_v63  ;;  %v469_v10 = vpop.f32.mrb[11].mxu1 }
 0x1d2   :  { %v486_v12 = vmax.f32 %v379_v4, 0.0  ;;  %v470_v13 = vadd.f32 %v469_v10, %v282_v63 }
 0x1d3   :  { %v494_v16 = vmax.f32 %v468_v8, 0.0  ;;  %v487_v17 = vmax.f32 %v381_v9, 0.0  ;;  %v384_v18 = vpop.f32.mrb[12].mxu0 }
 0x1d4   :  { %v1758_v20 = vpack.c.bf16 %v486_v12, %v484_v11  ;;  %v495_v21 = vmax.f32 %v470_v13, 0.0  ;;  %v473_v22 = vpop.f32.mrb[12].mxu1  ;;  %v386_v23 = vpop.f32.mrb[13].mxu0  ;;  %v385_v29 = vadd.f32 %v384_v18, %v287_v24 }
 0x1d5   :  { %v1766_v25 = vpack.c.bf16 %v494_v16, %v492_v14  ;;  %v1756_v26 = vpack.c.bf16 %v487_v17, %v485_v15  ;;  %v475_v27 = vpop.f32.mrb[13].mxu1  ;;  %v474_v31 = vadd.f32 %v473_v22, %v287_v24  ;;  %v387_v32 = vadd.f32 %v386_v23, %v287_v24 }
 0x1d6   :  { %v1764_v28 = vpack.c.bf16 %v495_v21, %v493_v19  ;;  %v476_v34 = vadd.f32 %v475_v27, %v287_v24  ;;  %v488_v41 = vmax.f32 %v385_v29, 0.0 }
 0x1d7   :  { %v390_v33 = vpop.f32.mrb[14].mxu0  ;;  %1757 = vmatprep.subr.bf16.mxu0 %v1756_v26  ;;  %v496_v44 = vmax.f32 %v474_v31, 0.0  ;;  %v489_v45 = vmax.f32 %v387_v32, 0.0  ;;  %v526_v31 = vpop.permute.xlu1 %525 }
 0x1d8   :  { %v391_v35 = vadd.f32 %v390_v33, %v292_v30  ;;  %v479_v36 = vpop.f32.mrb[14].mxu1  ;;  %1765 = vmatprep.subr.bf16.mxu1 %v1764_v28  ;;  %v392_v37 = vpop.f32.mrb[15].mxu0  ;;  %1759 = vmatpush1.bf16.msra.mxu0 %v1758_v20  ;;  %v497_v48 = vmax.f32 %v476_v34, 0.0 }
 0x1d9   :  { %v480_v38 = vadd.f32 %v479_v36, %v292_v30  ;;  %v393_v39 = vadd.f32 %v392_v37, %v292_v30  ;;  %v481_v40 = vpop.f32.mrb[15].mxu1  ;;  %1767 = vmatpush1.bf16.msra.mxu1 %v1766_v25  ;;  %v521_v25 = vpop.permute.xlu0 %520 }
 0x1da   :  { %v490_v42 = vmax.f32 %v391_v35, 0.0  ;;  %v482_v43 = vadd.f32 %v481_v40, %v292_v30 }
 0x1db   :  { %v498_v46 = vmax.f32 %v480_v38, 0.0  ;;  %v491_v47 = vmax.f32 %v393_v39, 0.0 }
 0x1dc   :  { %v1762_v49 = vpack.c.bf16 %v490_v42, %v488_v41  ;;  %v499_v50 = vmax.f32 %v482_v43, 0.0 }
 0x1dd   :  { %v1770_v51 = vpack.c.bf16 %v498_v46, %v496_v44  ;;  %v1760_v52 = vpack.c.bf16 %v491_v47, %v489_v45 }
 0x1de   :  { %v1768_v53 = vpack.c.bf16 %v499_v50, %v497_v48 }
 0x1df   :  { %1761 = vmatprep.subr.bf16.mxu0 %v1760_v52 }
 0x1e0   :  { %1769 = vmatprep.subr.bf16.mxu1 %v1768_v53  ;;  %1763 = vmatpush1.bf16.msra.mxu0 %v1762_v49 }
 0x1e1   :  { %1771 = vmatpush1.bf16.msra.mxu1 %v1770_v51 }
 0x1e3   :  { %1684 = vmatmul.mubr.msk.f32.vlgmr.msra.gmra.mrb[16].mxu0 %vm59_vm0, %v500_v54 }
 0x1e4   :  { %1688 = vmatmul.mubr.msk.f32.vlgmr.msra.gmra.mrb[16].mxu1 %vm59_vm0, %v500_v54  ;;  %610 = vmatprep.mubr.f32.mxu0 %v1867_v7 }
 0x1e5   :  { %699 = vmatprep.mubr.f32.mxu1 %v1867_v7 }
 0x1e7   :  { %1685 = vmatmul.mubr.msk.f32.gmra.mrb[18].mxu0 %vm59_vm0, %v501_v55 }
 0x1e8   :  { %1689 = vmatmul.mubr.msk.f32.gmra.mrb[18].mxu1 %vm59_vm0, %v501_v55  ;;  %616 = vmatprep.mubr.f32.mxu0 %v1867_v7  ;;  %v734_v55 = vld [vmem:[%s2227_s1 + $0x60] sm:$0xff] }
 0x1e9   :  { %705 = vmatprep.mubr.f32.mxu1 %v1867_v7 }
 0x1eb   :  { %1686 = vmatmul.mubr.msk.f32.gmra.mrb[20].mxu0 %vm59_vm0, %v502_v56 }
 0x1ec   :  { %1690 = vmatmul.mubr.msk.f32.gmra.mrb[20].mxu1 %vm59_vm0, %v502_v56  ;;  %622 = vmatprep.mubr.f32.mxu0 %v1867_v7  ;;  %v735_v56 = vld [vmem:[%s2227_s1 + $0x68] sm:$0xff] }
 0x1ed   :  { %711 = vmatprep.mubr.f32.mxu1 %v1867_v7 }
 0x1ef   :  { %1687 = vmatmul.mubr.msk.f32.gmra.mrb[22].mxu0 %vm59_vm0, %v503_v57 }
 0x1f0   :  { %1691 = vmatmul.mubr.msk.f32.gmra.mrb[22].mxu1 %vm59_vm0, %v503_v57  ;;  %838 = vmatprep.mubr.f32.mxu0 %v1867_v7  ;;  %v736_v57 = vld [vmem:[%s2227_s1 + $0x70] sm:$0xff] }
 0x1f1   :  { %927 = vmatprep.mubr.f32.mxu1 %v1867_v7 }
 0x2b6   :  { %v606_v58 = vpop.f32.mrb[16].mxu0 }
 0x2b7   :  { %v695_v59 = vpop.f32.mrb[16].mxu1  ;;  %v608_v60 = vpop.f32.mrb[17].mxu0  ;;  %v607_v63 = vadd.f32 %v606_v58, %v511_v61  ;;  %v737_v58 = vld [vmem:[%s2227_s1 + $0x78] sm:$0xff] }
 0x2b8   :  { %v697_v62 = vpop.f32.mrb[17].mxu1  ;;  %v696_v1 = vadd.f32 %v695_v59, %v511_v61  ;;  %v609_v2 = vadd.f32 %v608_v60, %v511_v61 }
 0x2b9   :  { %v698_v4 = vadd.f32 %v697_v62, %v511_v61  ;;  %v718_v12 = vmax.f32 %v607_v63, 0.0  ;;  %v745_v62 = vpop.permute.xlu0 %744 }
 0x2ba   :  { %v612_v3 = vpop.f32.mrb[18].mxu0  ;;  %v726_v15 = vmax.f32 %v696_v1, 0.0  ;;  %v719_v16 = vmax.f32 %v609_v2, 0.0  ;;  %v750_v1 = vpop.permute.xlu1 %749 }
 0x2bb   :  { %v613_v5 = vadd.f32 %v612_v3, %v516_v0  ;;  %v701_v6 = vpop.f32.mrb[18].mxu1  ;;  %v614_v8 = vpop.f32.mrb[19].mxu0  ;;  %v727_v20 = vmax.f32 %v698_v4, 0.0 }
 0x2bc   :  { %v702_v9 = vadd.f32 %v701_v6, %v516_v0  ;;  %v615_v10 = vadd.f32 %v614_v8, %v516_v0  ;;  %v703_v11 = vpop.f32.mrb[19].mxu1 }
 0x2bd   :  { %v720_v13 = vmax.f32 %v613_v5, 0.0  ;;  %v704_v14 = vadd.f32 %v703_v11, %v516_v0 }
 0x2be   :  { %v728_v17 = vmax.f32 %v702_v9, 0.0  ;;  %v721_v18 = vmax.f32 %v615_v10, 0.0  ;;  %v618_v19 = vpop.f32.mrb[20].mxu0 }
 0x2bf   :  { %v1774_v21 = vpack.c.bf16 %v720_v13, %v718_v12  ;;  %v729_v22 = vmax.f32 %v704_v14, 0.0  ;;  %v707_v23 = vpop.f32.mrb[20].mxu1  ;;  %v620_v24 = vpop.f32.mrb[21].mxu0  ;;  %v619_v30 = vadd.f32 %v618_v19, %v521_v25 }
 0x2c0   :  { %v1782_v26 = vpack.c.bf16 %v728_v17, %v726_v15  ;;  %v1772_v27 = vpack.c.bf16 %v721_v18, %v719_v16  ;;  %v709_v28 = vpop.f32.mrb[21].mxu1  ;;  %v708_v32 = vadd.f32 %v707_v23, %v521_v25  ;;  %v621_v33 = vadd.f32 %v620_v24, %v521_v25 }
 0x2c1   :  { %v1780_v29 = vpack.c.bf16 %v729_v22, %v727_v20  ;;  %v710_v35 = vadd.f32 %v709_v28, %v521_v25  ;;  %v722_v42 = vmax.f32 %v619_v30, 0.0 }
 0x2c2   :  { %v624_v34 = vpop.f32.mrb[22].mxu0  ;;  %1773 = vmatprep.subr.bf16.mxu0 %v1772_v27  ;;  %v730_v45 = vmax.f32 %v708_v32, 0.0  ;;  %v723_v46 = vmax.f32 %v621_v33, 0.0  ;;  %v760_v32 = vpop.permute.xlu1 %759 }
 0x2c3   :  { %v625_v36 = vadd.f32 %v624_v34, %v526_v31  ;;  %v713_v37 = vpop.f32.mrb[22].mxu1  ;;  %1781 = vmatprep.subr.bf16.mxu1 %v1780_v29  ;;  %v626_v38 = vpop.f32.mrb[23].mxu0  ;;  %1775 = vmatpush1.bf16.msra.mxu0 %v1774_v21  ;;  %v731_v49 = vmax.f32 %v710_v35, 0.0 }
 0x2c4   :  { %v714_v39 = vadd.f32 %v713_v37, %v526_v31  ;;  %v627_v40 = vadd.f32 %v626_v38, %v526_v31  ;;  %v715_v41 = vpop.f32.mrb[23].mxu1  ;;  %1783 = vmatpush1.bf16.msra.mxu1 %v1782_v26  ;;  %v755_v26 = vpop.permute.xlu0 %754 }
 0x2c5   :  { %v724_v43 = vmax.f32 %v625_v36, 0.0  ;;  %v716_v44 = vadd.f32 %v715_v41, %v526_v31 }
 0x2c6   :  { %v732_v47 = vmax.f32 %v714_v39, 0.0  ;;  %v725_v48 = vmax.f32 %v627_v40, 0.0 }
 0x2c7   :  { %v1778_v50 = vpack.c.bf16 %v724_v43, %v722_v42  ;;  %v733_v51 = vmax.f32 %v716_v44, 0.0 }
 0x2c8   :  { %v1786_v52 = vpack.c.bf16 %v732_v47, %v730_v45  ;;  %v1776_v53 = vpack.c.bf16 %v725_v48, %v723_v46 }
 0x2c9   :  { %v1784_v54 = vpack.c.bf16 %v733_v51, %v731_v49 }
 0x2ca   :  { %1777 = vmatprep.subr.bf16.mxu0 %v1776_v53 }
 0x2cb   :  { %1785 = vmatprep.subr.bf16.mxu1 %v1784_v54  ;;  %1779 = vmatpush1.bf16.msra.mxu0 %v1778_v50 }
 0x2cc   :  { %1787 = vmatpush1.bf16.msra.mxu1 %v1786_v52 }
 0x2ce   :  { %1692 = vmatmul.mubr.msk.f32.vlgmr.msra.gmra.mrb[24].mxu0 %vm59_vm0, %v734_v55 }
 0x2cf   :  { %1696 = vmatmul.mubr.msk.f32.vlgmr.msra.gmra.mrb[24].mxu1 %vm59_vm0, %v734_v55  ;;  %844 = vmatprep.mubr.f32.mxu0 %v1867_v7 }
 0x2d0   :  { %933 = vmatprep.mubr.f32.mxu1 %v1867_v7 }
 0x2d2   :  { %1693 = vmatmul.mubr.msk.f32.gmra.mrb[26].mxu0 %vm59_vm0, %v735_v56 }
 0x2d3   :  { %1697 = vmatmul.mubr.msk.f32.gmra.mrb[26].mxu1 %vm59_vm0, %v735_v56  ;;  %850 = vmatprep.mubr.f32.mxu0 %v1867_v7  ;;  %v968_v56 = vld [vmem:[%s2227_s1 + $0x80] sm:$0xff] }
 0x2d4   :  { %939 = vmatprep.mubr.f32.mxu1 %v1867_v7 }
 0x2d6   :  { %1694 = vmatmul.mubr.msk.f32.gmra.mrb[28].mxu0 %vm59_vm0, %v736_v57 }
 0x2d7   :  { %1698 = vmatmul.mubr.msk.f32.gmra.mrb[28].mxu1 %vm59_vm0, %v736_v57  ;;  %856 = vmatprep.mubr.f32.mxu0 %v1867_v7  ;;  %v969_v57 = vld [vmem:[%s2227_s1 + $0x88] sm:$0xff] }
 0x2d8   :  { %945 = vmatprep.mubr.f32.mxu1 %v1867_v7 }
 0x2da   :  { %1695 = vmatmul.mubr.msk.f32.gmra.mrb[30].mxu0 %vm59_vm0, %v737_v58 }
 0x2db   :  { %1699 = vmatmul.mubr.msk.f32.gmra.mrb[30].mxu1 %vm59_vm0, %v737_v58  ;;  %1072 = vmatprep.mubr.f32.mxu0 %v1867_v7  ;;  %v970_v58 = vld [vmem:[%s2227_s1 + $0x90] sm:$0xff] }
 0x2dc   :  { %1161 = vmatprep.mubr.f32.mxu1 %v1867_v7 }
 0x3a1   :  { %v840_v59 = vpop.f32.mrb[24].mxu0 }
 0x3a2   :  { %v929_v60 = vpop.f32.mrb[24].mxu1  ;;  %v842_v61 = vpop.f32.mrb[25].mxu0  ;;  %v841_v0 = vadd.f32 %v840_v59, %v745_v62  ;;  %v971_v59 = vld [vmem:[%s2227_s1 + $0x98] sm:$0xff] }
 0x3a3   :  { %v931_v63 = vpop.f32.mrb[25].mxu1  ;;  %v930_v2 = vadd.f32 %v929_v60, %v745_v62  ;;  %v843_v3 = vadd.f32 %v842_v61, %v745_v62 }
 0x3a4   :  { %v932_v5 = vadd.f32 %v931_v63, %v745_v62  ;;  %v952_v13 = vmax.f32 %v841_v0, 0.0  ;;  %v979_v63 = vpop.permute.xlu0 %978 }
 0x3a5   :  { %v846_v4 = vpop.f32.mrb[26].mxu0  ;;  %v960_v16 = vmax.f32 %v930_v2, 0.0  ;;  %v953_v17 = vmax.f32 %v843_v3, 0.0  ;;  %v984_v2 = vpop.permute.xlu1 %983 }
 0x3a6   :  { %v847_v6 = vadd.f32 %v846_v4, %v750_v1  ;;  %v935_v8 = vpop.f32.mrb[26].mxu1  ;;  %v848_v9 = vpop.f32.mrb[27].mxu0  ;;  %v961_v21 = vmax.f32 %v932_v5, 0.0 }
 0x3a7   :  { %v936_v10 = vadd.f32 %v935_v8, %v750_v1  ;;  %v849_v11 = vadd.f32 %v848_v9, %v750_v1  ;;  %v937_v12 = vpop.f32.mrb[27].mxu1 }
 0x3a8   :  { %v954_v14 = vmax.f32 %v847_v6, 0.0  ;;  %v938_v15 = vadd.f32 %v937_v12, %v750_v1 }
 0x3a9   :  { %v962_v18 = vmax.f32 %v936_v10, 0.0  ;;  %v955_v19 = vmax.f32 %v849_v11, 0.0  ;;  %v852_v20 = vpop.f32.mrb[28].mxu0 }
 0x3aa   :  { %v1790_v22 = vpack.c.bf16 %v954_v14, %v952_v13  ;;  %v963_v23 = vmax.f32 %v938_v15, 0.0  ;;  %v941_v24 = vpop.f32.mrb[28].mxu1  ;;  %v854_v25 = vpop.f32.mrb[29].mxu0  ;;  %v853_v31 = vadd.f32 %v852_v20, %v755_v26 }
 0x3ab   :  { %v1798_v27 = vpack.c.bf16 %v962_v18, %v960_v16  ;;  %v1788_v28 = vpack.c.bf16 %v955_v19, %v953_v17  ;;  %v943_v29 = vpop.f32.mrb[29].mxu1  ;;  %v942_v33 = vadd.f32 %v941_v24, %v755_v26  ;;  %v855_v34 = vadd.f32 %v854_v25, %v755_v26 }
 0x3ac   :  { %v1796_v30 = vpack.c.bf16 %v963_v23, %v961_v21  ;;  %v944_v36 = vadd.f32 %v943_v29, %v755_v26  ;;  %v956_v43 = vmax.f32 %v853_v31, 0.0 }
 0x3ad   :  { %v858_v35 = vpop.f32.mrb[30].mxu0  ;;  %1789 = vmatprep.subr.bf16.mxu0 %v1788_v28  ;;  %v964_v46 = vmax.f32 %v942_v33, 0.0  ;;  %v957_v47 = vmax.f32 %v855_v34, 0.0  ;;  %v994_v33 = vpop.permute.xlu1 %993 }
 0x3ae   :  { %v859_v37 = vadd.f32 %v858_v35, %v760_v32  ;;  %v947_v38 = vpop.f32.mrb[30].mxu1  ;;  %1797 = vmatprep.subr.bf16.mxu1 %v1796_v30  ;;  %v860_v39 = vpop.f32.mrb[31].mxu0  ;;  %1791 = vmatpush1.bf16.msra.mxu0 %v1790_v22  ;;  %v965_v50 = vmax.f32 %v944_v36, 0.0 }
 0x3af   :  { %v948_v40 = vadd.f32 %v947_v38, %v760_v32  ;;  %v861_v41 = vadd.f32 %v860_v39, %v760_v32  ;;  %v949_v42 = vpop.f32.mrb[31].mxu1  ;;  %1799 = vmatpush1.bf16.msra.mxu1 %v1798_v27  ;;  %v989_v27 = vpop.permute.xlu0 %988 }
 0x3b0   :  { %v958_v44 = vmax.f32 %v859_v37, 0.0  ;;  %v950_v45 = vadd.f32 %v949_v42, %v760_v32 }
 0x3b1   :  { %v966_v48 = vmax.f32 %v948_v40, 0.0  ;;  %v959_v49 = vmax.f32 %v861_v41, 0.0 }
 0x3b2   :  { %v1794_v51 = vpack.c.bf16 %v958_v44, %v956_v43  ;;  %v967_v52 = vmax.f32 %v950_v45, 0.0 }
 0x3b3   :  { %v1802_v53 = vpack.c.bf16 %v966_v48, %v964_v46  ;;  %v1792_v54 = vpack.c.bf16 %v959_v49, %v957_v47 }
 0x3b4   :  { %v1800_v55 = vpack.c.bf16 %v967_v52, %v965_v50 }
 0x3b5   :  { %1793 = vmatprep.subr.bf16.mxu0 %v1792_v54 }
 0x3b6   :  { %1801 = vmatprep.subr.bf16.mxu1 %v1800_v55  ;;  %1795 = vmatpush1.bf16.msra.mxu0 %v1794_v51 }
 0x3b7   :  { %1803 = vmatpush1.bf16.msra.mxu1 %v1802_v53 }
 0x3b9   :  { %1700 = vmatmul.mubr.msk.f32.vlgmr.msra.gmra.mrb[32].mxu0 %vm59_vm0, %v968_v56 }
 0x3ba   :  { %1704 = vmatmul.mubr.msk.f32.vlgmr.msra.gmra.mrb[32].mxu1 %vm59_vm0, %v968_v56  ;;  %1078 = vmatprep.mubr.f32.mxu0 %v1867_v7 }
 0x3bb   :  { %1167 = vmatprep.mubr.f32.mxu1 %v1867_v7 }
 0x3bd   :  { %1701 = vmatmul.mubr.msk.f32.gmra.mrb[34].mxu0 %vm59_vm0, %v969_v57 }
 0x3be   :  { %1705 = vmatmul.mubr.msk.f32.gmra.mrb[34].mxu1 %vm59_vm0, %v969_v57  ;;  %1084 = vmatprep.mubr.f32.mxu0 %v1867_v7  ;;  %v1202_v57 = vld [vmem:[%s2227_s1 + $0xa0] sm:$0xff] }
 0x3bf   :  { %1173 = vmatprep.mubr.f32.mxu1 %v1867_v7 }
 0x3c1   :  { %1702 = vmatmul.mubr.msk.f32.gmra.mrb[36].mxu0 %vm59_vm0, %v970_v58 }
 0x3c2   :  { %1706 = vmatmul.mubr.msk.f32.gmra.mrb[36].mxu1 %vm59_vm0, %v970_v58  ;;  %1090 = vmatprep.mubr.f32.mxu0 %v1867_v7  ;;  %v1203_v58 = vld [vmem:[%s2227_s1 + $0xa8] sm:$0xff] }
 0x3c3   :  { %1179 = vmatprep.mubr.f32.mxu1 %v1867_v7 }
 0x3c5   :  { %1703 = vmatmul.mubr.msk.f32.gmra.mrb[38].mxu0 %vm59_vm0, %v971_v59 }
 0x3c6   :  { %1707 = vmatmul.mubr.msk.f32.gmra.mrb[38].mxu1 %vm59_vm0, %v971_v59  ;;  %1306 = vmatprep.mubr.f32.mxu0 %v1867_v7  ;;  %v1204_v59 = vld [vmem:[%s2227_s1 + $0xb0] sm:$0xff] }
 0x3c7   :  { %1395 = vmatprep.mubr.f32.mxu1 %v1867_v7 }
 0x48c   :  { %v1074_v60 = vpop.f32.mrb[32].mxu0 }
 0x48d   :  { %v1163_v61 = vpop.f32.mrb[32].mxu1  ;;  %v1076_v62 = vpop.f32.mrb[33].mxu0  ;;  %v1075_v1 = vadd.f32 %v1074_v60, %v979_v63  ;;  %v1205_v60 = vld [vmem:[%s2227_s1 + $0xb8] sm:$0xff] }
 0x48e   :  { %v1165_v0 = vpop.f32.mrb[33].mxu1  ;;  %v1164_v3 = vadd.f32 %v1163_v61, %v979_v63  ;;  %v1077_v4 = vadd.f32 %v1076_v62, %v979_v63 }
 0x48f   :  { %v1166_v6 = vadd.f32 %v1165_v0, %v979_v63  ;;  %v1186_v14 = vmax.f32 %v1075_v1, 0.0  ;;  %v1213_v0 = vpop.permute.xlu0 %1212 }
 0x490   :  { %v1080_v5 = vpop.f32.mrb[34].mxu0  ;;  %v1194_v17 = vmax.f32 %v1164_v3, 0.0  ;;  %v1187_v18 = vmax.f32 %v1077_v4, 0.0  ;;  %v1218_v3 = vpop.permute.xlu1 %1217 }
 0x491   :  { %v1081_v8 = vadd.f32 %v1080_v5, %v984_v2  ;;  %v1169_v9 = vpop.f32.mrb[34].mxu1  ;;  %v1082_v10 = vpop.f32.mrb[35].mxu0  ;;  %v1195_v22 = vmax.f32 %v1166_v6, 0.0 }
 0x492   :  { %v1170_v11 = vadd.f32 %v1169_v9, %v984_v2  ;;  %v1083_v12 = vadd.f32 %v1082_v10, %v984_v2  ;;  %v1171_v13 = vpop.f32.mrb[35].mxu1 }
 0x493   :  { %v1188_v15 = vmax.f32 %v1081_v8, 0.0  ;;  %v1172_v16 = vadd.f32 %v1171_v13, %v984_v2 }
 0x494   :  { %v1196_v19 = vmax.f32 %v1170_v11, 0.0  ;;  %v1189_v20 = vmax.f32 %v1083_v12, 0.0  ;;  %v1086_v21 = vpop.f32.mrb[36].mxu0 }
 0x495   :  { %v1806_v23 = vpack.c.bf16 %v1188_v15, %v1186_v14  ;;  %v1197_v24 = vmax.f32 %v1172_v16, 0.0  ;;  %v1175_v25 = vpop.f32.mrb[36].mxu1  ;;  %v1088_v26 = vpop.f32.mrb[37].mxu0  ;;  %v1087_v32 = vadd.f32 %v1086_v21, %v989_v27 }
 0x496   :  { %v1814_v28 = vpack.c.bf16 %v1196_v19, %v1194_v17  ;;  %v1804_v29 = vpack.c.bf16 %v1189_v20, %v1187_v18  ;;  %v1177_v30 = vpop.f32.mrb[37].mxu1  ;;  %v1176_v34 = vadd.f32 %v1175_v25, %v989_v27  ;;  %v1089_v35 = vadd.f32 %v1088_v26, %v989_v27 }
 0x497   :  { %v1812_v31 = vpack.c.bf16 %v1197_v24, %v1195_v22  ;;  %v1178_v37 = vadd.f32 %v1177_v30, %v989_v27  ;;  %v1190_v44 = vmax.f32 %v1087_v32, 0.0 }
 0x498   :  { %v1092_v36 = vpop.f32.mrb[38].mxu0  ;;  %1805 = vmatprep.subr.bf16.mxu0 %v1804_v29  ;;  %v1198_v47 = vmax.f32 %v1176_v34, 0.0  ;;  %v1191_v48 = vmax.f32 %v1089_v35, 0.0  ;;  %v1228_v34 = vpop.permute.xlu1 %1227 }
 0x499   :  { %v1093_v38 = vadd.f32 %v1092_v36, %v994_v33  ;;  %v1181_v39 = vpop.f32.mrb[38].mxu1  ;;  %1813 = vmatprep.subr.bf16.mxu1 %v1812_v31  ;;  %v1094_v40 = vpop.f32.mrb[39].mxu0  ;;  %1807 = vmatpush1.bf16.msra.mxu0 %v1806_v23  ;;  %v1199_v51 = vmax.f32 %v1178_v37, 0.0 }
 0x49a   :  { %v1182_v41 = vadd.f32 %v1181_v39, %v994_v33  ;;  %v1095_v42 = vadd.f32 %v1094_v40, %v994_v33  ;;  %v1183_v43 = vpop.f32.mrb[39].mxu1  ;;  %1815 = vmatpush1.bf16.msra.mxu1 %v1814_v28  ;;  %v1223_v28 = vpop.permute.xlu0 %1222 }
 0x49b   :  { %v1192_v45 = vmax.f32 %v1093_v38, 0.0  ;;  %v1184_v46 = vadd.f32 %v1183_v43, %v994_v33 }
 0x49c   :  { %v1200_v49 = vmax.f32 %v1182_v41, 0.0  ;;  %v1193_v50 = vmax.f32 %v1095_v42, 0.0 }
 0x49d   :  { %v1810_v52 = vpack.c.bf16 %v1192_v45, %v1190_v44  ;;  %v1201_v53 = vmax.f32 %v1184_v46, 0.0 }
 0x49e   :  { %v1818_v54 = vpack.c.bf16 %v1200_v49, %v1198_v47  ;;  %v1808_v55 = vpack.c.bf16 %v1193_v50, %v1191_v48 }
 0x49f   :  { %v1816_v56 = vpack.c.bf16 %v1201_v53, %v1199_v51 }
 0x4a0   :  { %1809 = vmatprep.subr.bf16.mxu0 %v1808_v55 }
 0x4a1   :  { %1817 = vmatprep.subr.bf16.mxu1 %v1816_v56  ;;  %1811 = vmatpush1.bf16.msra.mxu0 %v1810_v52 }
 0x4a2   :  { %1819 = vmatpush1.bf16.msra.mxu1 %v1818_v54 }
 0x4a4   :  { %1708 = vmatmul.mubr.msk.f32.vlgmr.msra.gmra.mrb[40].mxu0 %vm59_vm0, %v1202_v57 }
 0x4a5   :  { %1712 = vmatmul.mubr.msk.f32.vlgmr.msra.gmra.mrb[40].mxu1 %vm59_vm0, %v1202_v57  ;;  %1312 = vmatprep.mubr.f32.mxu0 %v1867_v7 }
 0x4a6   :  { %1401 = vmatprep.mubr.f32.mxu1 %v1867_v7 }
 0x4a8   :  { %1709 = vmatmul.mubr.msk.f32.gmra.mrb[42].mxu0 %vm59_vm0, %v1203_v58 }
 0x4a9   :  { %1713 = vmatmul.mubr.msk.f32.gmra.mrb[42].mxu1 %vm59_vm0, %v1203_v58  ;;  %1318 = vmatprep.mubr.f32.mxu0 %v1867_v7  ;;  %v1436_v58 = vld [vmem:[%s2227_s1 + $0xc0] sm:$0xff] }
 0x4aa   :  { %1407 = vmatprep.mubr.f32.mxu1 %v1867_v7 }
 0x4ac   :  { %1710 = vmatmul.mubr.msk.f32.gmra.mrb[44].mxu0 %vm59_vm0, %v1204_v59 }
 0x4ad   :  { %1714 = vmatmul.mubr.msk.f32.gmra.mrb[44].mxu1 %vm59_vm0, %v1204_v59  ;;  %1324 = vmatprep.mubr.f32.mxu0 %v1867_v7  ;;  %v1437_v59 = vld [vmem:[%s2227_s1 + $0xc8] sm:$0xff] }
 0x4ae   :  { %1413 = vmatprep.mubr.f32.mxu1 %v1867_v7 }
 0x4b0   :  { %1711 = vmatmul.mubr.msk.f32.gmra.mrb[46].mxu0 %vm59_vm0, %v1205_v60 }
 0x4b1   :  { %1715 = vmatmul.mubr.msk.f32.gmra.mrb[46].mxu1 %vm59_vm0, %v1205_v60  ;;  %1538 = vmatprep.mubr.f32.mxu0 %v1867_v7  ;;  %v1438_v60 = vld [vmem:[%s2227_s1 + $0xd0] sm:$0xff] }
 0x4b2   :  { %1623 = vmatprep.mubr.f32.mxu1 %v1867_v7 }
 0x577   :  { %v1308_v61 = vpop.f32.mrb[40].mxu0 }
 0x578   :  { %v1397_v62 = vpop.f32.mrb[40].mxu1  ;;  %v1310_v63 = vpop.f32.mrb[41].mxu0  ;;  %v1309_v2 = vadd.f32 %v1308_v61, %v1213_v0  ;;  %v1439_v61 = vld [vmem:[%s2227_s1 + $0xd8] sm:$0xff]  ;;  %s1843_s1 = scalar_lea.vmem %s1658_s12, 1024 }
 0x579   :  { %v1399_v1 = vpop.f32.mrb[41].mxu1  ;;  %v1398_v4 = vadd.f32 %v1397_v62, %v1213_v0  ;;  %v1311_v5 = vadd.f32 %v1310_v63, %v1213_v0  ;;  %v1447_v62 = vpop.permute.xlu0 %1446  ;;  %p1844_p0 = scmp.ne.s32.totalorder %s1658_s12, %s1843_s1  ;;  %p1849_p2 = scmp.lt.s32.totalorder %s1843_s1, %s1843_s1 }
 0x57a   :  { %v1400_v8 = vadd.f32 %v1399_v1, %v1213_v0  ;;  %v1420_v15 = vmax.f32 %v1309_v2, 0.0 }
 0x57b   :  { %v1314_v6 = vpop.f32.mrb[42].mxu0  ;;  %v1428_v18 = vmax.f32 %v1398_v4, 0.0  ;;  %v1421_v19 = vmax.f32 %v1311_v5, 0.0  ;;  %p1850_p3 = por %p1849_p2, %p1848_p1 }
 0x57c   :  { %v1315_v9 = vadd.f32 %v1314_v6, %v1218_v3  ;;  %v1403_v10 = vpop.f32.mrb[42].mxu1  ;;  %v1316_v11 = vpop.f32.mrb[43].mxu0  ;;  %v1429_v23 = vmax.f32 %v1400_v8, 0.0 }
 0x57d   :  { %v1404_v12 = vadd.f32 %v1403_v10, %v1218_v3  ;;  %v1317_v13 = vadd.f32 %v1316_v11, %v1218_v3  ;;  %v1405_v14 = vpop.f32.mrb[43].mxu1  ;;  %v1452_v8 = vpop.permute.xlu1 %1451  ;;  %p1851_p4 = pnand %p1850_p3, %p1844_p0 }
 0x57e   :  { %v1422_v16 = vmax.f32 %v1315_v9, 0.0  ;;  %v1406_v17 = vadd.f32 %v1405_v14, %v1218_v3 }
 0x57f   :  { %v1430_v20 = vmax.f32 %v1404_v12, 0.0  ;;  %v1423_v21 = vmax.f32 %v1317_v13, 0.0  ;;  %v1320_v22 = vpop.f32.mrb[44].mxu0 }
 0x580   :  { %v1822_v24 = vpack.c.bf16 %v1422_v16, %v1420_v15  ;;  %v1431_v25 = vmax.f32 %v1406_v17, 0.0  ;;  %v1409_v26 = vpop.f32.mrb[44].mxu1  ;;  %v1322_v27 = vpop.f32.mrb[45].mxu0  ;;  %v1321_v33 = vadd.f32 %v1320_v22, %v1223_v28 }
 0x581   :  { %v1830_v29 = vpack.c.bf16 %v1430_v20, %v1428_v18  ;;  %v1820_v30 = vpack.c.bf16 %v1423_v21, %v1421_v19  ;;  %v1411_v31 = vpop.f32.mrb[45].mxu1  ;;  %v1410_v35 = vadd.f32 %v1409_v26, %v1223_v28  ;;  %v1323_v36 = vadd.f32 %v1322_v27, %v1223_v28 }
 0x582   :  { %v1828_v32 = vpack.c.bf16 %v1431_v25, %v1429_v23  ;;  %v1412_v38 = vadd.f32 %v1411_v31, %v1223_v28  ;;  %v1424_v45 = vmax.f32 %v1321_v33, 0.0 }
 0x583   :  { %v1326_v37 = vpop.f32.mrb[46].mxu0  ;;  %1821 = vmatprep.subr.bf16.mxu0 %v1820_v30  ;;  %v1432_v48 = vmax.f32 %v1410_v35, 0.0  ;;  %v1425_v49 = vmax.f32 %v1323_v36, 0.0 }
 0x584   :  { %v1327_v39 = vadd.f32 %v1326_v37, %v1228_v34  ;;  %v1415_v40 = vpop.f32.mrb[46].mxu1  ;;  %1829 = vmatprep.subr.bf16.mxu1 %v1828_v32  ;;  %v1328_v41 = vpop.f32.mrb[47].mxu0  ;;  %1823 = vmatpush1.bf16.msra.mxu0 %v1822_v24  ;;  %v1433_v52 = vmax.f32 %v1412_v38, 0.0 }
 0x585   :  { %v1416_v42 = vadd.f32 %v1415_v40, %v1228_v34  ;;  %v1329_v43 = vadd.f32 %v1328_v41, %v1228_v34  ;;  %v1417_v44 = vpop.f32.mrb[47].mxu1  ;;  %1831 = vmatpush1.bf16.msra.mxu1 %v1830_v29 }
 0x586   :  { %v1426_v46 = vmax.f32 %v1327_v39, 0.0  ;;  %v1418_v47 = vadd.f32 %v1417_v44, %v1228_v34 }
 0x587   :  { %v1434_v50 = vmax.f32 %v1416_v42, 0.0  ;;  %v1427_v51 = vmax.f32 %v1329_v43, 0.0 }
 0x588   :  { %v1826_v53 = vpack.c.bf16 %v1426_v46, %v1424_v45  ;;  %v1435_v54 = vmax.f32 %v1418_v47, 0.0 }
 0x589   :  { %v1834_v55 = vpack.c.bf16 %v1434_v50, %v1432_v48  ;;  %v1824_v56 = vpack.c.bf16 %v1427_v51, %v1425_v49 }
 0x58a   :  { %v1832_v57 = vpack.c.bf16 %v1435_v54, %v1433_v52 }
 0x58b   :  { %1825 = vmatprep.subr.bf16.mxu0 %v1824_v56 }
 0x58c   :  { %1833 = vmatprep.subr.bf16.mxu1 %v1832_v57  ;;  %1827 = vmatpush1.bf16.msra.mxu0 %v1826_v53 }
 0x58d   :  { %1835 = vmatpush1.bf16.msra.mxu1 %v1834_v55 }
 0x58f   :  { %1716 = vmatmul.mubr.msk.f32.vlgmr.msra.gmra.mrb[48].mxu0 %vm59_vm0, %v1436_v58 }
 0x590   :  { %1720 = vmatmul.mubr.msk.f32.vlgmr.msra.gmra.mrb[48].mxu1 %vm59_vm0, %v1436_v58  ;;  %1544 = vmatprep.mubr.f32.mxu0 %v1867_v7 }
 0x591   :  { %1629 = vmatprep.mubr.f32.mxu1 %v1867_v7 }
 0x593   :  { %1717 = vmatmul.mubr.msk.f32.gmra.mrb[50].mxu0 %vm59_vm0, %v1437_v59 }
 0x594   :  { %1721 = vmatmul.mubr.msk.f32.gmra.mrb[50].mxu1 %vm59_vm0, %v1437_v59  ;;  %1550 = vmatprep.mubr.f32.mxu0 %v1867_v7 }
 0x595   :  { %1635 = vmatprep.mubr.f32.mxu1 %v1867_v7 }
 0x597   :  { %1718 = vmatmul.mubr.msk.f32.gmra.mrb[52].mxu0 %vm59_vm0, %v1438_v60 }
 0x598   :  { %1722 = vmatmul.mubr.msk.f32.gmra.mrb[52].mxu1 %vm59_vm0, %v1438_v60  ;;  %1554 = vmatprep.mubr.f32.mxu0 %v1867_v7 }
 0x599   :  { %1639 = vmatprep.mubr.f32.mxu1 %v1867_v7 }
 0x59b   :  { %1719 = vmatmul.mubr.msk.f32.gmra.mrb[54].mxu0 %vm59_vm0, %v1439_v61 }
 0x59c   :  { %1723 = vmatmul.mubr.msk.f32.gmra.mrb[54].mxu1 %vm59_vm0, %v1439_v61 }
 0x662   :  { %v1540_v63 = vpop.f32.mrb[48].mxu0 }
 0x663   :  { %v1541_v0 = vadd.f32 %v1540_v63, %v1447_v62  ;;  %v1625_v1 = vpop.f32.mrb[48].mxu1  ;;  %v1542_v2 = vpop.f32.mrb[49].mxu0 }
 0x664   :  { %v1626_v3 = vadd.f32 %v1625_v1, %v1447_v62  ;;  %v1543_v4 = vadd.f32 %v1542_v2, %v1447_v62  ;;  %v1627_v5 = vpop.f32.mrb[49].mxu1 }
 0x665   :  { %1644 = vst [vmem:[#allocation2] sm:$0xff] %v1541_v0  ;;  %v1628_v6 = vadd.f32 %v1627_v5, %v1447_v62 }
 0x666   :  { %1648 = vst [vmem:[#allocation2 + $0x10] sm:$0xff] %v1626_v3  ;;  %1645 = vst [vmem:[#allocation2 + $0x8] sm:$0xff] %v1543_v4  ;;  %v1546_v7 = vpop.f32.mrb[50].mxu0 }
 0x667   :  { %1649 = vst [vmem:[#allocation2 + $0x18] sm:$0xff] %v1628_v6  ;;  %v1547_v9 = vadd.f32 %v1546_v7, %v1452_v8  ;;  %v1631_v10 = vpop.f32.mrb[50].mxu1  ;;  %v1548_v11 = vpop.f32.mrb[51].mxu0 }
 0x668   :  { %v1632_v12 = vadd.f32 %v1631_v10, %v1452_v8  ;;  %v1549_v13 = vadd.f32 %v1548_v11, %v1452_v8  ;;  %v1633_v14 = vpop.f32.mrb[51].mxu1 }
 0x669   :  { %1646 = vst [vmem:[#allocation2 + $0x20] sm:$0xff] %v1547_v9  ;;  %v1634_v15 = vadd.f32 %v1633_v14, %v1452_v8 }
 0x66a   :  { %1650 = vst [vmem:[#allocation2 + $0x30] sm:$0xff] %v1632_v12  ;;  %1647 = vst [vmem:[#allocation2 + $0x28] sm:$0xff] %v1549_v13  ;;  %v1552_v16 = vpop.f32.mrb[52].mxu0 }
 0x66b   :  { %1651 = vst [vmem:[#allocation2 + $0x38] sm:$0xff] %v1634_v15  ;;  %v1637_v17 = vpop.f32.mrb[52].mxu1  ;;  %v1553_v18 = vpop.f32.mrb[53].mxu0 }
 0x66c   :  { %v1638_v19 = vpop.f32.mrb[53].mxu1 }
 0x66d   :  { %1854 = shalt.err (!%p1851_p4)
}
 0x66e   :  { %s1855_s15 = scalar_lea.hbm %s2229_s3, 1024 }
 0x66f   :  { %p1856_p5 = scmp.ne.s32.totalorder %s2229_s3, %s1855_s15  ;;  %p1859_p6 = scmp.lt.u32.totalorder %s1855_s15, %s2229_s3 }
 0x671   :  { %p1861_p7 = pnand %p1859_p6, %p1856_p5 }
 0x673   :  { %1864 = shalt.err (!%p1861_p7)
}
 0x674   :  { %s1870_s20 = smov 512   ;;  %s1871_s2 = smov 32   ;;  %v1556_v20 = vpop.f32.mrb[54].mxu0  ;;  %v1641_v21 = vpop.f32.mrb[54].mxu1 }
 0x675   :  { %1663 = dma.vmem_to_hbm [thread:$0]  %s1658_s12, 1024, %s2229_s3, [#allocation3], %s1870_s20, %s1870_s20, %s1871_s2   ;;  %v1557_v22 = vpop.f32.mrb[55].mxu0  ;;  %v1642_v23 = vpop.f32.mrb[55].mxu1 }
 0x676   :  { %1865 = dma.done.wait [#allocation3], 1024  }
 0x677   :  { %1866 = vsyncadd [#allocation3], 4294966272 }
 0x678   :  { %1667 = vsyncpa [#allocation3], 1 }

</bundles_post_ra>
